<compile_context>
chip_gen: v7x
topology: tpu7x:2x2x1
jax: 0.10.0
libtpu: 0.0.40
codegen_flags: <defaults>
</compile_context>

<pallas_src>
import jax
import jax.numpy as jnp
from jax.experimental import pallas as pl
from jax.experimental.pallas import tpu as pltpu

_SQRT2 = 1.4142135623730951


def _gelu(x):
    # exact (erf-based) GELU == torch.nn.GELU() default, kept in f32
    return 0.5 * x * (1.0 + jax.lax.erf(x / jnp.float32(_SQRT2)))


def _round_up(n, m):
    return ((n + m - 1) // m) * m


def _zpad(a, shape):
    return jnp.pad(a, [(0, s - d) for d, s in zip(a.shape, shape)])


# ----------------------------------------------------------------------------
# kernel
# ----------------------------------------------------------------------------
def risk_classifier_kernel(
    x_ref,     # (C, TB, HWp)  bf16  image tile, channel-major, spatial flattened
    yh1_ref,   # (TB, H1p)     f32   precomputed  emb[disease_code] @ w1y + b1
    mask_ref,  # (TB, Kp)      i32   nonzero -> fill -10000.0
    wb_ref,    # (Cp, Fp)      f32   GAP->feature surrogate weight (1/HW folded in)
    bb_ref,    # (1, Fp)       f32
    w1x_ref,   # (Fp, H1p)     bf16  head linear rows acting on the image features
    w2_ref,    # (H1p, Kp)     bf16  classifier weight
    b2_ref,    # (1, Kp)       f32
    out_ref,   # (TB, Kp)      f32
):
    C = x_ref.shape[0]

    # ---------------- BaseModel ----------------
    # TODO(synk): the pretrained resnetv2_50x3_bitm_in21k backbone has no clean
    # single-kernel Pallas equivalent; it is replaced by a GAP + Linear
    # surrogate producing num_base_features (1/HW already folded into wb).
    wb = wb_ref[...]                                   # (Cp, Fp) f32
    feat = bb_ref[...]                                 # (1, Fp) f32, broadcasts up
    for c in range(C):                                 # C tiny & static: VPU broadcast-FMA,
        pooled_c = jnp.sum(x_ref[c].astype(jnp.float32),   # f32-accumulated GAP
                           axis=-1, keepdims=True)     # (TB, 1)
        feat = feat + pooled_c * wb[c:c + 1, :]        # (TB, Fp)

    # ------------- RiskHeadClassifier (eval: dropout = identity) -------------
    x = _gelu(feat)                                    # (TB, Fp) f32

    # linear over concat([x, y]) expressed as x @ W1[:F]  +  (emb@W1[F:]+b1)[code];
    # the second term was precomputed outside the kernel (yh1_ref).
    h = jnp.dot(x.astype(jnp.bfloat16), w1x_ref[...],
                preferred_element_type=jnp.float32)    # (TB, H1p) f32
    h = _gelu(h + yh1_ref[...])

    out = jnp.dot(h.astype(jnp.bfloat16), w2_ref[...],
                  preferred_element_type=jnp.float32) + b2_ref[...]   # (TB, Kp)

    # out.masked_fill_(mask, -10000.0)
    out_ref[...] = jnp.where(mask_ref[...] != 0, jnp.float32(-10000.0), out)


# ----------------------------------------------------------------------------
# wrapper
# ----------------------------------------------------------------------------
def prepare_params(p, hw):
    """One-time prep: fold 1/HW into wb, precompute the embedding-side head
    contribution (emb @ w1y + b1), zero-pad feature dims to (8,128)-friendly
    sizes, cast MXU weights to bf16 (everything else stays f32)."""
    C, F = p["wb"].shape
    E, _ = p["emb"].shape
    H1 = p["b1"].shape[-1]
    K = p["b2"].shape[-1]
    Fp, H1p, Kp = _round_up(F, 128), _round_up(H1, 128), _round_up(K, 128)
    Cp = _round_up(C, 8)
    emb_head = p["emb"] @ p["w1y"] + p["b1"]           # (E, H1) f32
    return {
        "wb":       _zpad(p["wb"] / jnp.float32(hw), (Cp, Fp)).astype(jnp.float32),
        "bb":       _zpad(p["bb"], (1, Fp)).astype(jnp.float32),
        "emb_head": _zpad(emb_head, (E, H1p)).astype(jnp.float32),
        "w1x":      _zpad(p["w1x"], (Fp, H1p)).astype(jnp.bfloat16),
        "w2":       _zpad(p["w2"], (H1p, Kp)).astype(jnp.bfloat16),
        "b2":       _zpad(p["b2"], (1, Kp)).astype(jnp.float32),
    }


def _pick_tb(B, per_row_bytes, resident_bytes, *, tb_max, vmem_budget_bytes):
    """VMEM-budgeted batch-tile: as large as possible (up to tb_max, multiple
    of 8), but split into >=2 grid steps for real batches so the parallel axis
    shards across v7x's two TensorCores and keeps pipelining alive."""
    avail = max(vmem_budget_bytes - resident_bytes - (2 << 20), 8 * per_row_bytes)
    tb = (avail // per_row_bytes) // 8 * 8
    tb = max(8, min(tb, tb_max, _round_up(B, 8)))
    if B > 8 and _round_up(B, tb) == tb:               # would collapse to 1 grid step
        tb = max(8, _round_up(pl.cdiv(B, 2), 8))
    return tb


def risk_classifier_forward(x, disease_code, mask, pp, *, tb_max=256,
                            vmem_budget_bytes=40 * 1024 * 1024):
    """x: (B, C, H, W) f32 NCHW; disease_code: (B,) int; mask: (B, K) bool.

    tb_max is the per-generation batch-tile cap (256 for v6e/v7x, use 128 on v5e).
    """
    B, C, H, W = x.shape
    K = mask.shape[-1]
    HW = H * W
    HWp = _round_up(HW, 128)
    Fp = pp["bb"].shape[-1]
    E, H1p = pp["emb_head"].shape
    Kp = pp["b2"].shape[-1]
    Cp = pp["wb"].shape[0]

    # double-buffered per-row streaming cost + resident weight footprint
    per_row = (2 * C * HWp * 2      # x tile   (bf16)
               + 2 * H1p * 4        # yh1 tile (f32)
               + 2 * Kp * 4         # mask tile (i32)
               + 2 * Kp * 4)        # out tile  (f32)
    resident = 2 * (Cp * Fp * 4 + Fp * 4 + Fp * H1p * 2 + H1p * Kp * 2 + Kp * 4)
    tb = _pick_tb(B, per_row, resident, tb_max=tb_max,
                  vmem_budget_bytes=vmem_budget_bytes)
    Bp = _round_up(B, tb)

    # image -> channel-major (C, Bp, HWp) bf16: each block's trailing (tb, HWp)
    # tile is fully sublane/lane dense (no 3-of-8-sublane waste, no masked vld).
    x_cbs = jnp.transpose(x.reshape(B, C, HW), (1, 0, 2))
    x_cbs = _zpad(x_cbs, (C, Bp, HWp)).astype(jnp.bfloat16)

    # embedding-side head term gathered outside the kernel (XLA gather).
    # codes are clamped; PyTorch nn.Embedding would raise on out-of-range.
    code = jnp.clip(disease_code.astype(jnp.int32), 0, E - 1)
    yh1 = _zpad(pp["emb_head"][code], (Bp, H1p)).astype(jnp.float32)
    mask_i = _zpad(mask.astype(jnp.int32), (Bp, Kp))

    grid_spec = pltpu.PrefetchScalarGridSpec(
        num_scalar_prefetch=0,
        grid=(Bp // tb,),
        in_specs=[
            pl.BlockSpec((C, tb, HWp), lambda b: (0, b, 0)),   # image tile
            pl.BlockSpec((tb, H1p),    lambda b: (b, 0)),      # emb@w1y+b1 tile
            pl.BlockSpec((tb, Kp),     lambda b: (b, 0)),      # mask tile
            pl.BlockSpec((Cp, Fp),     lambda b: (0, 0)),      # weights: constant
            pl.BlockSpec((1, Fp),      lambda b: (0, 0)),      #   index_map, DMA'd
            pl.BlockSpec((Fp, H1p),    lambda b: (0, 0)),      #   once and kept
            pl.BlockSpec((H1p, Kp),    lambda b: (0, 0)),      #   VMEM-resident
            pl.BlockSpec((1, Kp),      lambda b: (0, 0)),
        ],
        out_specs=pl.BlockSpec((tb, Kp), lambda b: (b, 0)),
    )
    out = pl.pallas_call(
        risk_classifier_kernel,
        out_shape=jax.ShapeDtypeStruct((Bp, Kp), jnp.float32),
        grid_spec=grid_spec,
        compiler_params=pltpu.CompilerParams(
            dimension_semantics=("parallel",),
            vmem_limit_bytes=48 * 1024 * 1024),
    )(x_cbs, yh1, mask_i, pp["wb"], pp["bb"], pp["w1x"], pp["w2"], pp["b2"])
    return out[:B, :K]


# ----------------------------------------------------------------------------
# params / reference
# ----------------------------------------------------------------------------
def init_params(key, *, in_ch=3, num_base_features=1000, hidden_feature=200,
                num_classes=4, embedding_dim=100, num_embeddings=21):
    ks = jax.random.split(key, 8)
    s = 0.02
    F, D, H1, K = num_base_features, embedding_dim, hidden_feature, num_classes
    return {
        # base-model surrogate: Linear(in_ch -> F) applied after GAP
        "wb":  s * jax.random.normal(ks[0], (in_ch, F), jnp.float32),
        "bb":  s * jax.random.normal(ks[1], (1, F), jnp.float32),
        # nn.Embedding(num_embeddings, embedding_dim)
        "emb": s * jax.random.normal(ks[2], (num_embeddings, D), jnp.float32),
        # nn.Linear(F + D, H1), stored transposed and split into [F | D] rows
        "w1x": s * jax.random.normal(ks[3], (F, H1), jnp.float32),
        "w1y": s * jax.random.normal(ks[4], (D, H1), jnp.float32),
        "b1":  s * jax.random.normal(ks[5], (1, H1), jnp.float32),
        # nn.Linear(H1, K)
        "w2":  s * jax.random.normal(ks[6], (H1, K), jnp.float32),
        "b2":  s * jax.random.normal(ks[7], (1, K), jnp.float32),
    }


def reference_forward(x, disease_code, mask, p):
    """Pure-JAX f32 reference of the same forward (GAP surrogate + head)."""
    B, C, H, W = x.shape
    pooled = x.reshape(B, C, H * W).mean(-1)
    feat = pooled @ p["wb"] + p["bb"]
    xg = _gelu(feat)
    y = p["emb"][disease_code]
    h = _gelu(xg @ p["w1x"] + y @ p["w1y"] + p["b1"])
    out = h @ p["w2"] + p["b2"]
    return jnp.where(mask, jnp.float32(-10000.0), out)


if __name__ == "__main__":
    key = jax.random.PRNGKey(0)
    k_img, k_code, k_mask, k_params = jax.random.split(key, 4)

    B, C, H, W = 2, 3, 16, 16
    num_classes = 4
    num_embeddings = 21

    x = jax.random.normal(k_img, (B, C, H, W), jnp.float32)
    disease_code = jax.random.randint(k_code, (B,), 0, num_embeddings, jnp.int32)
    mask = jax.random.uniform(k_mask, (B, num_classes)) < 0.25   # bool mask

    params = init_params(k_params, in_ch=C, num_classes=num_classes,
                         num_embeddings=num_embeddings)
    padded_params = prepare_params(params, hw=H * W)

    out = risk_classifier_forward(x, disease_code, mask, padded_params)
    out = jax.block_until_ready(out)

    ref = reference_forward(x, disease_code, mask, params)
    assert out.shape == (B, num_classes) and out.dtype == jnp.float32
    assert bool(jnp.allclose(out, ref, rtol=5e-2, atol=1e-2)), "mismatch vs reference"
    print("KERNEL_OK")
</pallas_src>

<mosaic_0001>
module attributes {stable_mosaic.version = 11 : i64} {
  func.func @risk_classifier_kernel(%arg0: i32, %arg1: memref<3x8x256xbf16, #tpu.memory_space<vmem>>, %arg2: memref<8x256xf32, #tpu.memory_space<vmem>>, %arg3: memref<8x128xi32, #tpu.memory_space<vmem>>, %arg4: memref<8x1024xf32, #tpu.memory_space<vmem>>, %arg5: memref<1x1024xf32, #tpu.memory_space<vmem>>, %arg6: memref<1024x256xbf16, #tpu.memory_space<vmem>>, %arg7: memref<256x128xbf16, #tpu.memory_space<vmem>>, %arg8: memref<1x128xf32, #tpu.memory_space<vmem>>, %arg9: memref<8x128xf32, #tpu.memory_space<vmem>>) attributes {dimension_semantics = [#tpu.dimension_semantics<parallel>], iteration_bounds = array<i64: 1>, scalar_prefetch = 0 : i64, scratch_operands = 0 : i64, tpu.core_type = #tpu.core_type<tc>, window_params = [{transform_indices = @transform_0, window_bounds = array<i64: 3, 8, 256>}, {transform_indices = @transform_1, window_bounds = array<i64: 8, 256>}, {transform_indices = @transform_2, window_bounds = array<i64: 8, 128>}, {pipeline_mode = #tpu.pipeline_mode<synchronous>, transform_indices = @transform_3, window_bounds = array<i64: 8, 1024>}, {pipeline_mode = #tpu.pipeline_mode<synchronous>, transform_indices = @transform_4, window_bounds = array<i64: 1, 1024>}, {pipeline_mode = #tpu.pipeline_mode<synchronous>, transform_indices = @transform_5, window_bounds = array<i64: 1024, 256>}, {pipeline_mode = #tpu.pipeline_mode<synchronous>, transform_indices = @transform_6, window_bounds = array<i64: 256, 128>}, {pipeline_mode = #tpu.pipeline_mode<synchronous>, transform_indices = @transform_7, window_bounds = array<i64: 1, 128>}, {transform_indices = @transform_8, window_bounds = array<i64: 8, 128>}]} {
    %c0 = arith.constant 0 : index
    %c0_0 = arith.constant 0 : index
    %0 = vector.load %arg4[%c0, %c0_0] : memref<8x1024xf32, #tpu.memory_space<vmem>>, vector<8x1024xf32>
    %c0_1 = arith.constant 0 : index
    %c0_2 = arith.constant 0 : index
    %1 = vector.load %arg5[%c0_1, %c0_2] : memref<1x1024xf32, #tpu.memory_space<vmem>>, vector<1x1024xf32>
    %c0_3 = arith.constant 0 : index
    %c0_4 = arith.constant 0 : index
    %c0_5 = arith.constant 0 : index
    %2 = vector.load %arg1[%c0_3, %c0_4, %c0_5] : memref<3x8x256xbf16, #tpu.memory_space<vmem>>, vector<1x8x256xbf16>
    %3 = vector.shape_cast %2 : vector<1x8x256xbf16> to vector<8x256xbf16>
    %4 = arith.extf %3 : vector<8x256xbf16> to vector<8x256xf32>
    %cst = arith.constant dense<0.000000e+00> : vector<8xf32>
    %5 = vector.multi_reduction <add>, %4, %cst [1] : vector<8x256xf32> to vector<8xf32>
    %6 = vector.shape_cast %5 : vector<8xf32> to vector<8x1xf32>
    %7 = vector.extract_strided_slice %0 {offsets = [0, 0], sizes = [1, 1024], strides = [1, 1]} : vector<8x1024xf32> to vector<1x1024xf32>
    %8 = vector.broadcast %6 : vector<8x1xf32> to vector<8x1024xf32>
    %9 = vector.broadcast %7 : vector<1x1024xf32> to vector<8x1024xf32>
    %10 = arith.mulf %8, %9 : vector<8x1024xf32>
    %11 = vector.broadcast %1 : vector<1x1024xf32> to vector<8x1024xf32>
    %12 = arith.addf %11, %10 : vector<8x1024xf32>
    %c1 = arith.constant 1 : index
    %c0_6 = arith.constant 0 : index
    %c0_7 = arith.constant 0 : index
    %13 = vector.load %arg1[%c1, %c0_6, %c0_7] : memref<3x8x256xbf16, #tpu.memory_space<vmem>>, vector<1x8x256xbf16>
    %14 = vector.shape_cast %13 : vector<1x8x256xbf16> to vector<8x256xbf16>
    %15 = arith.extf %14 : vector<8x256xbf16> to vector<8x256xf32>
    %cst_8 = arith.constant dense<0.000000e+00> : vector<8xf32>
    %16 = vector.multi_reduction <add>, %15, %cst_8 [1] : vector<8x256xf32> to vector<8xf32>
    %17 = vector.shape_cast %16 : vector<8xf32> to vector<8x1xf32>
    %18 = vector.extract_strided_slice %0 {offsets = [1, 0], sizes = [1, 1024], strides = [1, 1]} : vector<8x1024xf32> to vector<1x1024xf32>
    %19 = vector.broadcast %17 : vector<8x1xf32> to vector<8x1024xf32>
    %20 = vector.broadcast %18 : vector<1x1024xf32> to vector<8x1024xf32>
    %21 = arith.mulf %19, %20 : vector<8x1024xf32>
    %22 = arith.addf %12, %21 : vector<8x1024xf32>
    %c2 = arith.constant 2 : index
    %c0_9 = arith.constant 0 : index
    %c0_10 = arith.constant 0 : index
    %23 = vector.load %arg1[%c2, %c0_9, %c0_10] : memref<3x8x256xbf16, #tpu.memory_space<vmem>>, vector<1x8x256xbf16>
    %24 = vector.shape_cast %23 : vector<1x8x256xbf16> to vector<8x256xbf16>
    %25 = arith.extf %24 : vector<8x256xbf16> to vector<8x256xf32>
    %cst_11 = arith.constant dense<0.000000e+00> : vector<8xf32>
    %26 = vector.multi_reduction <add>, %25, %cst_11 [1] : vector<8x256xf32> to vector<8xf32>
    %27 = vector.shape_cast %26 : vector<8xf32> to vector<8x1xf32>
    %28 = vector.extract_strided_slice %0 {offsets = [2, 0], sizes = [1, 1024], strides = [1, 1]} : vector<8x1024xf32> to vector<1x1024xf32>
    %29 = vector.broadcast %27 : vector<8x1xf32> to vector<8x1024xf32>
    %30 = vector.broadcast %28 : vector<1x1024xf32> to vector<8x1024xf32>
    %31 = arith.mulf %29, %30 : vector<8x1024xf32>
    %32 = arith.addf %22, %31 : vector<8x1024xf32>
    %cst_12 = arith.constant 5.000000e-01 : f32
    %33 = vector.broadcast %cst_12 : f32 to vector<8x1024xf32>
    %34 = arith.mulf %33, %32 : vector<8x1024xf32>
    %cst_13 = arith.constant 1.41421354 : f32
    %35 = vector.broadcast %cst_13 : f32 to vector<8x1024xf32>
    %36 = arith.divf %32, %35 : vector<8x1024xf32>
    %37 = math.erf %36 : vector<8x1024xf32>
    %cst_14 = arith.constant 1.000000e+00 : f32
    %38 = vector.broadcast %cst_14 : f32 to vector<8x1024xf32>
    %39 = arith.addf %38, %37 : vector<8x1024xf32>
    %40 = arith.mulf %34, %39 : vector<8x1024xf32>
    %41 = arith.truncf %40 : vector<8x1024xf32> to vector<8x1024xbf16>
    %c0_15 = arith.constant 0 : index
    %c0_16 = arith.constant 0 : index
    %42 = vector.load %arg6[%c0_15, %c0_16] : memref<1024x256xbf16, #tpu.memory_space<vmem>>, vector<1024x256xbf16>
    %cst_17 = arith.constant dense<0.000000e+00> : vector<8x256xf32>
    %43 = tpu.matmul %41, %42, %cst_17 {dimension_numbers = #tpu.dot_dimension_numbers<[1], [0], [0], [1], [0, 0, 1, 1], [], []>} : vector<8x1024xbf16>, vector<1024x256xbf16>, vector<8x256xf32> -> vector<8x256xf32>
    %c0_18 = arith.constant 0 : index
    %c0_19 = arith.constant 0 : index
    %44 = vector.load %arg2[%c0_18, %c0_19] : memref<8x256xf32, #tpu.memory_space<vmem>>, vector<8x256xf32>
    %45 = arith.addf %43, %44 : vector<8x256xf32>
    %cst_20 = arith.constant 5.000000e-01 : f32
    %46 = vector.broadcast %cst_20 : f32 to vector<8x256xf32>
    %47 = arith.mulf %46, %45 : vector<8x256xf32>
    %cst_21 = arith.constant 1.41421354 : f32
    %48 = vector.broadcast %cst_21 : f32 to vector<8x256xf32>
    %49 = arith.divf %45, %48 : vector<8x256xf32>
    %50 = math.erf %49 : vector<8x256xf32>
    %cst_22 = arith.constant 1.000000e+00 : f32
    %51 = vector.broadcast %cst_22 : f32 to vector<8x256xf32>
    %52 = arith.addf %51, %50 : vector<8x256xf32>
    %53 = arith.mulf %47, %52 : vector<8x256xf32>
    %54 = arith.truncf %53 : vector<8x256xf32> to vector<8x256xbf16>
    %c0_23 = arith.constant 0 : index
    %c0_24 = arith.constant 0 : index
    %55 = vector.load %arg7[%c0_23, %c0_24] : memref<256x128xbf16, #tpu.memory_space<vmem>>, vector<256x128xbf16>
    %cst_25 = arith.constant dense<0.000000e+00> : vector<8x128xf32>
    %56 = tpu.matmul %54, %55, %cst_25 {dimension_numbers = #tpu.dot_dimension_numbers<[1], [0], [0], [1], [0, 0, 1, 1], [], []>} : vector<8x256xbf16>, vector<256x128xbf16>, vector<8x128xf32> -> vector<8x128xf32>
    %c0_26 = arith.constant 0 : index
    %c0_27 = arith.constant 0 : index
    %57 = vector.load %arg8[%c0_26, %c0_27] : memref<1x128xf32, #tpu.memory_space<vmem>>, vector<1x128xf32>
    %58 = vector.broadcast %57 : vector<1x128xf32> to vector<8x128xf32>
    %59 = arith.addf %56, %58 : vector<8x128xf32>
    %c0_28 = arith.constant 0 : index
    %c0_29 = arith.constant 0 : index
    %60 = vector.load %arg3[%c0_28, %c0_29] : memref<8x128xi32, #tpu.memory_space<vmem>>, vector<8x128xi32>
    %c0_i32 = arith.constant 0 : i32
    %61 = vector.broadcast %c0_i32 : i32 to vector<8x128xi32>
    %62 = arith.cmpi ne, %60, %61 : vector<8x128xi32>
    %cst_30 = arith.constant -1.000000e+04 : f32
    %63 = vector.broadcast %cst_30 : f32 to vector<8x128xf32>
    %64 = arith.select %62, %63, %59 : vector<8x128xi1>, vector<8x128xf32>
    %c0_31 = arith.constant 0 : index
    %c0_32 = arith.constant 0 : index
    %65 = vector.load %arg9[%c0_31, %c0_32] : memref<8x128xf32, #tpu.memory_space<vmem>>, vector<8x128xf32>
    tpu.vector_store %arg9[%c0_31, %c0_32], %64 {strides = array<i32>} : memref<8x128xf32, #tpu.memory_space<vmem>>, vector<8x128xf32>,
    return
  }
  func.func @transform_0(%arg0: i32) -> (i32, i32, i32) {
    %c0_i32 = arith.constant 0 : i32
    %c0_i32_0 = arith.constant 0 : i32
    %c0_i32_1 = arith.constant 0 : i32
    return %c0_i32, %arg0, %c0_i32_0 : i32, i32, i32
  }
  func.func @transform_1(%arg0: i32) -> (i32, i32) {
    %c0_i32 = arith.constant 0 : i32
    %c0_i32_0 = arith.constant 0 : i32
    return %arg0, %c0_i32 : i32, i32
  }
  func.func @transform_2(%arg0: i32) -> (i32, i32) {
    %c0_i32 = arith.constant 0 : i32
    %c0_i32_0 = arith.constant 0 : i32
    return %arg0, %c0_i32 : i32, i32
  }
  func.func @transform_3(%arg0: i32) -> (i32, i32) {
    %c0_i32 = arith.constant 0 : i32
    %c0_i32_0 = arith.constant 0 : i32
    %c0_i32_1 = arith.constant 0 : i32
    return %c0_i32, %c0_i32_0 : i32, i32
  }
  func.func @transform_4(%arg0: i32) -> (i32, i32) {
    %c0_i32 = arith.constant 0 : i32
    %c0_i32_0 = arith.constant 0 : i32
    %c0_i32_1 = arith.constant 0 : i32
    return %c0_i32, %c0_i32_0 : i32, i32
  }
  func.func @transform_5(%arg0: i32) -> (i32, i32) {
    %c0_i32 = arith.constant 0 : i32
    %c0_i32_0 = arith.constant 0 : i32
    %c0_i32_1 = arith.constant 0 : i32
    return %c0_i32, %c0_i32_0 : i32, i32
  }
  func.func @transform_6(%arg0: i32) -> (i32, i32) {
    %c0_i32 = arith.constant 0 : i32
    %c0_i32_0 = arith.constant 0 : i32
    %c0_i32_1 = arith.constant 0 : i32
    return %c0_i32, %c0_i32_0 : i32, i32
  }
  func.func @transform_7(%arg0: i32) -> (i32, i32) {
    %c0_i32 = arith.constant 0 : i32
    %c0_i32_0 = arith.constant 0 : i32
    %c0_i32_1 = arith.constant 0 : i32
    return %c0_i32, %c0_i32_0 : i32, i32
  }
  func.func @transform_8(%arg0: i32) -> (i32, i32) {
    %c0_i32 = arith.constant 0 : i32
    %c0_i32_0 = arith.constant 0 : i32
    return %arg0, %c0_i32 : i32, i32
  }
}

</mosaic_0001>

<bundles_post_ra>
// kernel: tpu_custom_call.1
= control target key start
LH: loop header
LB: loop body
LE: loop exit
PB: predicated region body
PF: predicated region fallthrough
CT: control target
= control target key end

     0   :  { %13 = vsyncpa [#allocation3], 0  ;;  %s2336_s0 = inlined_call_operand.hbm [shape: bf16[3,8,256], index: 0, kind: input, shape index: {}]   ;;  %s2337_s1 = inlined_call_operand.hbm [shape: f32[8,256], index: 1, kind: input, shape index: {}]   ;;  %s2338_s2 = inlined_call_operand.hbm [shape: s32[8,128], index: 2, kind: input, shape index: {}]   ;;  %s2339_s3 = inlined_call_operand.hbm [shape: f32[8,1024], index: 3, kind: input, shape index: {}]   ;;  %s2340_s4 = inlined_call_operand.vmem [shape: f32[1,1024], index: 4, kind: input, shape index: {}]   ;;  %s2341_s5 = inlined_call_operand.hbm [shape: bf16[1024,256], index: 5, kind: input, shape index: {}]   ;;  %s2342_s6 = inlined_call_operand.hbm [shape: bf16[256,128], index: 6, kind: input, shape index: {}]   ;;  %s2343_s7 = inlined_call_operand.vmem [shape: f32[1,128], index: 7, kind: input, shape index: {}]   ;;  %s2344_s8 = inlined_call_operand.hbm [shape: f32[8,128], index: 8, kind: output, shape index: {}]  }
   0x1   :  { %14 = vsyncpa [#allocation6], 0 }
   0x2   :  { %15 = vsyncpa [#allocation9], 0 }
   0x3   :  { %16 = vsyncpa [#allocation12], 0 }
   0x4   :  { %17 = vsyncpa [#allocation4], 0  ;;  %s2095_s27 = smov [#allocation5]   ;;  %s2096_s29 = smov [#allocation8]  }
   0x5   :  { %s36_s28 = sshll.u32 %s2095_s27, 4  ;;  %s56_s30 = sshll.u32 %s2096_s29, 4  ;;  %s37_s28 = int_to_ptr.vmem [resolvable:$true] %s36_s28  ;;  %s57_s30 = int_to_ptr.vmem [resolvable:$true] %s56_s30 }
   0x6   :  { %s1931_s11 = scalar_lea.hbm %s2337_s1, 256 }
   0x7   :  { %p1932_p0 = scmp.ne.s32.totalorder %s2337_s1, %s1931_s11  ;;  %p1935_p1 = scmp.lt.u32.totalorder %s1931_s11, %s2337_s1 }
   0x9   :  { %p1937_p2 = pnand %p1935_p1, %p1932_p0 }
   0xb   :  { %1940 = shalt.err (!%p1937_p2)
}
   0xc   :  { %s1941_s16 = scalar_lea.vmem %s37_s28, 256  ;;  %p1946_p4 = scmp.lt.s32.totalorder %s37_s28, %s37_s28 }
   0xd   :  { %p1942_p3 = scmp.ne.s32.totalorder %s37_s28, %s1941_s16  ;;  %p1947_p5 = scmp.lt.s32.totalorder %s1941_s16, %s1941_s16 }
   0xf   :  { %p1948_p6 = por %p1947_p5, %p1946_p4 }
  0x11   :  { %p1949_p7 = pnand %p1948_p6, %p1942_p3 }
  0x13   :  { %1952 = shalt.err (!%p1949_p7)
}
  0x14   :  { %39 = dma.hbm_to_vmem [thread:$0]  %s2337_s1, 256, %s37_s28, [#allocation6]  }
  0x15   :  { %s1953_s21 = scalar_lea.hbm %s2339_s3, 1024 }
  0x16   :  { %p1954_p8 = scmp.ne.s32.totalorder %s2339_s3, %s1953_s21  ;;  %p1957_p9 = scmp.lt.u32.totalorder %s1953_s21, %s2339_s3 }
  0x18   :  { %p1959_p10 = pnand %p1957_p9, %p1954_p8 }
  0x1a   :  { %1962 = shalt.err (!%p1959_p10)
}
  0x1b   :  { %s1963_s26 = scalar_lea.vmem %s57_s30, 1024  ;;  %p1968_p12 = scmp.lt.s32.totalorder %s57_s30, %s57_s30 }
  0x1c   :  { %p1964_p11 = scmp.ne.s32.totalorder %s57_s30, %s1963_s26  ;;  %p1969_p13 = scmp.lt.s32.totalorder %s1963_s26, %s1963_s26 }
  0x1e   :  { %p1970_p0 = por %p1969_p13, %p1968_p12 }
  0x20   :  { %p1971_p1 = pnand %p1970_p0, %p1964_p11 }
  0x22   :  { %1974 = shalt.err (!%p1971_p1)
}
  0x23   :  { %59 = dma.hbm_to_vmem [thread:$0]  %s2339_s3, 1024, %s57_s30, [#allocation9]  }
  0x24   :  { %s2097_s28 = smov [#allocation2]   ;;  %s1975_s11 = scalar_lea.hbm %s2336_s0, 384 }
  0x25   :  { %s23_s29 = sshll.u32 %s2097_s28, 4  ;;  %p1976_p2 = scmp.ne.s32.totalorder %s2336_s0, %s1975_s11  ;;  %s24_s29 = int_to_ptr.vmem [resolvable:$true] %s23_s29 }
  0x26   :  { %p1979_p3 = scmp.lt.u32.totalorder %s1975_s11, %s2336_s0 }
  0x28   :  { %p1981_p4 = pnand %p1979_p3, %p1976_p2 }
  0x2a   :  { %1984 = shalt.err (!%p1981_p4)
}
  0x2b   :  { %s1985_s16 = scalar_lea.vmem %s24_s29, 384  ;;  %p1990_p6 = scmp.lt.s32.totalorder %s24_s29, %s24_s29 }
  0x2c   :  { %p1986_p5 = scmp.ne.s32.totalorder %s24_s29, %s1985_s16  ;;  %p1991_p7 = scmp.lt.s32.totalorder %s1985_s16, %s1985_s16 }
  0x2e   :  { %p1992_p8 = por %p1991_p7, %p1990_p6 }
  0x30   :  { %p1993_p9 = pnand %p1992_p8, %p1986_p5 }
  0x32   :  { %1996 = shalt.err (!%p1993_p9)
}
  0x33   :  { %s2098_s3 = smov 128   ;;  %s2099_s30 = smov 8  }
  0x34   :  { %29 = dma.hbm_to_vmem [thread:$0]  %s2336_s0, 384, %s24_s29, [#allocation3], %s2098_s3, %s2098_s3, %s2099_s30  }
  0x35   :  { %s2100_s19 = smov [#allocation7]   ;;  %s2101_s21 = smov [#allocation10]  }
  0x36   :  { %s46_s20 = sshll.u32 %s2100_s19, 4  ;;  %s67_s22 = sshll.u32 %s2101_s21, 4  ;;  %s47_s20 = int_to_ptr.vmem [resolvable:$true] %s46_s20  ;;  %s68_s22 = int_to_ptr.vmem [resolvable:$true] %s67_s22 }
  0x37   :  { %s1997_s25 = scalar_lea.hbm %s2338_s2, 128 }
  0x38   :  { %p1998_p10 = scmp.ne.s32.totalorder %s2338_s2, %s1997_s25  ;;  %p2001_p11 = scmp.lt.u32.totalorder %s1997_s25, %s2338_s2 }
  0x3a   :  { %p2003_p12 = pnand %p2001_p11, %p1998_p10 }
  0x3c   :  { %2006 = shalt.err (!%p2003_p12)
}
  0x3d   :  { %s2007_s0 = scalar_lea.vmem %s47_s20, 128  ;;  %p2012_p0 = scmp.lt.s32.totalorder %s47_s20, %s47_s20 }
  0x3e   :  { %p2008_p13 = scmp.ne.s32.totalorder %s47_s20, %s2007_s0  ;;  %p2013_p1 = scmp.lt.s32.totalorder %s2007_s0, %s2007_s0 }
  0x40   :  { %p2014_p2 = por %p2013_p1, %p2012_p0 }
  0x42   :  { %p2015_p3 = pnand %p2014_p2, %p2008_p13 }
  0x44   :  { %2018 = shalt.err (!%p2015_p3)
}
  0x45   :  { %49 = dma.hbm_to_vmem [thread:$0]  %s2338_s2, 128, %s47_s20, [#allocation6]  }
  0x46   :  { %s2019_s12 = scalar_lea.hbm %s2341_s5, 16384 }
  0x47   :  { %p2020_p4 = scmp.ne.s32.totalorder %s2341_s5, %s2019_s12  ;;  %p2023_p5 = scmp.lt.u32.totalorder %s2019_s12, %s2341_s5 }
  0x49   :  { %p2025_p6 = pnand %p2023_p5, %p2020_p4 }
  0x4b   :  { %2028 = shalt.err (!%p2025_p6)
}
  0x4c   :  { %s2029_s17 = scalar_lea.vmem %s68_s22, 16384  ;;  %p2034_p8 = scmp.lt.s32.totalorder %s68_s22, %s68_s22 }
  0x4d   :  { %p2030_p7 = scmp.ne.s32.totalorder %s68_s22, %s2029_s17  ;;  %p2035_p9 = scmp.lt.s32.totalorder %s2029_s17, %s2029_s17 }
  0x4f   :  { %p2036_p10 = por %p2035_p9, %p2034_p8 }
  0x51   :  { %p2037_p11 = pnand %p2036_p10, %p2030_p7 }
  0x53   :  { %2040 = shalt.err (!%p2037_p11)
}
  0x54   :  { %73 = dma.hbm_to_vmem [thread:$0]  %s2341_s5, 16384, %s68_s22, [#allocation9], %s2098_s3, %s2098_s3, %s2099_s30  }
  0x55   :  { %s2102_s19 = smov [#allocation11]   ;;  %s2041_s24 = scalar_lea.hbm %s2342_s6, 2048 }
  0x56   :  { %s79_s20 = sshll.u32 %s2102_s19, 4  ;;  %p2042_p12 = scmp.ne.s32.totalorder %s2342_s6, %s2041_s24  ;;  %s80_s20 = int_to_ptr.vmem [resolvable:$true] %s79_s20 }
  0x57   :  { %p2045_p13 = scmp.lt.u32.totalorder %s2041_s24, %s2342_s6 }
  0x59   :  { %p2047_p0 = pnand %p2045_p13, %p2042_p12 }
  0x5b   :  { %2050 = shalt.err (!%p2047_p0)
}
  0x5c   :  { %s2051_s28 = scalar_lea.vmem %s80_s20, 2048  ;;  %p2056_p2 = scmp.lt.s32.totalorder %s80_s20, %s80_s20 }
  0x5d   :  { %p2052_p1 = scmp.ne.s32.totalorder %s80_s20, %s2051_s28  ;;  %p2057_p3 = scmp.lt.s32.totalorder %s2051_s28, %s2051_s28 }
  0x5f   :  { %p2058_p4 = por %p2057_p3, %p2056_p2 }
  0x61   :  { %p2059_p5 = pnand %p2058_p4, %p2052_p1 }
  0x63   :  { %2062 = shalt.err (!%p2059_p5)
}
  0x64   :  { %s2103_s5 = smov 64   ;;  %s2104_s3 = smov 4  }
  0x65   :  { %85 = dma.hbm_to_vmem [thread:$0]  %s2342_s6, 2048, %s80_s20, [#allocation12], %s2103_s5, %s2103_s5, %s2104_s3  }
  0x66   :  { %2085 = dma.done.wait [#allocation3], 384  }
  0x67   :  { %2086 = vsyncadd [#allocation3], 4294966912 }
  0x68   :  { %2087 = dma.done.wait [#allocation6], 384  }
  0x69   :  { %2088 = vsyncadd [#allocation6], 4294966912 }
  0x6a   :  { %2089 = dma.done.wait [#allocation9], 17408  }
  0x6b   :  { %2090 = vsyncadd [#allocation9], 4294949888 }
  0x6c   :  { %2091 = dma.done.wait [#allocation12], 2048  }
  0x6d   :  { %2092 = vsyncadd [#allocation12], 4294965248  ;;  %v116_v0 = vld [vmem:[#allocation2] sm:$0xff]  ;;  %v212_v1 = vld [vmem:[#allocation2 + $0x8] sm:$0xff]  ;;  %v122_v54 = vlaneseq  ;;  %s2105_s9 = smov [#allocation13]  }
  0x6e   :  { %v267_v2 = vld [vmem:[#allocation2 + $0x10] sm:$0xff]  ;;  %v117_v3 = vunpack.c.l.bf16 %v116_v0  ;;  %v118_v4 = vunpack.c.h.bf16 %v116_v0  ;;  %v213_v5 = vunpack.c.l.bf16 %v212_v1  ;;  %v214_v6 = vunpack.c.h.bf16 %v212_v1  ;;  %v1709_v15 = vld [vmem:[#allocation10 + $0x14] ss:$8 sps:$4 sm:$0xff]   ;;  %v1713_v18 = vld [vmem:[#allocation10 + $0x10] ss:$8 sps:$4 sm:$0xff]   ;;  %s1501_s10 = sshll.u32 %s2105_s9, 4  ;;  %s1502_s10 = int_to_ptr.vmem [resolvable:$true] %s1501_s10 }
  0x6f   :  { %v1703_v7 = vld [vmem:[#allocation10 + $0x4] ss:$8 sps:$4 sm:$0xff]   ;;  %v268_v8 = vunpack.c.l.bf16 %v267_v2  ;;  %v269_v9 = vunpack.c.h.bf16 %v267_v2  ;;  %v1707_v12 = vld [vmem:[#allocation10] ss:$8 sps:$4 sm:$0xff]   ;;  %v1711_v17 = vld [vmem:[#allocation10 + $0x214] ss:$8 sps:$4 sm:$0xff]   ;;  %p2068_p7 = scmp.lt.s32.totalorder %s1502_s10, %s1502_s10 }
  0x70   :  { %v1705_v10 = vld [vmem:[#allocation10 + $0x204] ss:$8 sps:$4 sm:$0xff]   ;;  %v119_v11 = vadd.f32 %v118_v4, %v117_v3  ;;  %1140 = vmatprep.subr.bf16.mxu1 %v1703_v7  ;;  %v1708_v13 = vld [vmem:[#allocation10 + $0x200] ss:$8 sps:$4 sm:$0xff]   ;;  %v215_v16 = vadd.f32 %v214_v6, %v213_v5  ;;  %v1714_v19 = vld [vmem:[#allocation10 + $0x210] ss:$8 sps:$4 sm:$0xff]  }
  0x71   :  { %v270_v14 = vadd.f32 %v269_v9, %v268_v8  ;;  %1222 = vmatprep.subr.bf16.mxu0 %v1705_v10  ;;  %1141 = vmatpush1.bf16.msra.mxu1 %v1707_v12  ;;  %v1715_v20 = vld [vmem:[#allocation10 + $0x24] ss:$8 sps:$4 sm:$0xff]   ;;  %v1719_v22 = vld [vmem:[#allocation10 + $0x20] ss:$8 sps:$4 sm:$0xff]   ;;  %v1721_v24 = vld [vmem:[#allocation10 + $0x34] ss:$8 sps:$4 sm:$0xff]  }
  0x72   :  { %120 = vadd.xlane.f32.xlu0 %v119_v11  ;;  %1223 = vmatpush1.bf16.msra.mxu0 %v1708_v13  ;;  %v1717_v21 = vld [vmem:[#allocation10 + $0x224] ss:$8 sps:$4 sm:$0xff]   ;;  %v1720_v23 = vld [vmem:[#allocation10 + $0x220] ss:$8 sps:$4 sm:$0xff]   ;;  %v1723_v25 = vld [vmem:[#allocation10 + $0x234] ss:$8 sps:$4 sm:$0xff]  }
  0x73   :  { %271 = vadd.xlane.f32.xlu1 %v270_v14  ;;  %1142 = vmatprep.subr.bf16.mxu1 %v1709_v15  ;;  %v1725_v26 = vld [vmem:[#allocation10 + $0x30] ss:$8 sps:$4 sm:$0xff]   ;;  %v1727_v28 = vld [vmem:[#allocation10 + $0x44] ss:$8 sps:$4 sm:$0xff]   ;;  %v1731_v30 = vld [vmem:[#allocation10 + $0x40] ss:$8 sps:$4 sm:$0xff]  }
  0x74   :  { %1224 = vmatprep.subr.bf16.mxu0 %v1711_v17  ;;  %v1726_v27 = vld [vmem:[#allocation10 + $0x230] ss:$8 sps:$4 sm:$0xff]   ;;  %v1729_v29 = vld [vmem:[#allocation10 + $0x244] ss:$8 sps:$4 sm:$0xff]   ;;  %v1732_v31 = vld [vmem:[#allocation10 + $0x240] ss:$8 sps:$4 sm:$0xff]  }
  0x75   :  { %1143 = vmatpush1.bf16.msra.mxu1 %v1713_v18  ;;  %v1733_v32 = vld [vmem:[#allocation10 + $0x54] ss:$8 sps:$4 sm:$0xff]   ;;  %v1737_v34 = vld [vmem:[#allocation10 + $0x50] ss:$8 sps:$4 sm:$0xff]   ;;  %v1739_v36 = vld [vmem:[#allocation10 + $0x64] ss:$8 sps:$4 sm:$0xff]  }
  0x76   :  { %216 = vadd.xlane.f32.xlu0 %v215_v16  ;;  %1225 = vmatpush1.bf16.msra.mxu0 %v1714_v19  ;;  %v1735_v33 = vld [vmem:[#allocation10 + $0x254] ss:$8 sps:$4 sm:$0xff]   ;;  %v1738_v35 = vld [vmem:[#allocation10 + $0x250] ss:$8 sps:$4 sm:$0xff]   ;;  %v1741_v37 = vld [vmem:[#allocation10 + $0x264] ss:$8 sps:$4 sm:$0xff]  }
  0x77   :  { %1144 = vmatprep.subr.bf16.mxu1 %v1715_v20  ;;  %1226 = vmatprep.subr.bf16.mxu0 %v1717_v21  ;;  %v1743_v38 = vld [vmem:[#allocation10 + $0x60] ss:$8 sps:$4 sm:$0xff]   ;;  %v1745_v40 = vld [vmem:[#allocation10 + $0x74] ss:$8 sps:$4 sm:$0xff]   ;;  %v1749_v42 = vld [vmem:[#allocation10 + $0x70] ss:$8 sps:$4 sm:$0xff]  }
  0x78   :  { %v1744_v39 = vld [vmem:[#allocation10 + $0x260] ss:$8 sps:$4 sm:$0xff]   ;;  %v1747_v41 = vld [vmem:[#allocation10 + $0x274] ss:$8 sps:$4 sm:$0xff]   ;;  %v1750_v43 = vld [vmem:[#allocation10 + $0x270] ss:$8 sps:$4 sm:$0xff]  }
  0x79   :  { %1145 = vmatpush1.bf16.msra.mxu1 %v1719_v22  ;;  %v1751_v44 = vld [vmem:[#allocation10 + $0x84] ss:$8 sps:$4 sm:$0xff]   ;;  %v1755_v46 = vld [vmem:[#allocation10 + $0x80] ss:$8 sps:$4 sm:$0xff]   ;;  %v1757_v48 = vld [vmem:[#allocation10 + $0x94] ss:$8 sps:$4 sm:$0xff]  }
  0x7a   :  { %1227 = vmatpush1.bf16.msra.mxu0 %v1720_v23  ;;  %1146 = vmatprep.subr.bf16.mxu1 %v1721_v24  ;;  %v1753_v45 = vld [vmem:[#allocation10 + $0x284] ss:$8 sps:$4 sm:$0xff]   ;;  %v1756_v47 = vld [vmem:[#allocation10 + $0x280] ss:$8 sps:$4 sm:$0xff]   ;;  %v1759_v49 = vld [vmem:[#allocation10 + $0x294] ss:$8 sps:$4 sm:$0xff]  }
  0x7b   :  { %1228 = vmatprep.subr.bf16.mxu0 %v1723_v25  ;;  %v1761_v50 = vld [vmem:[#allocation10 + $0x90] ss:$8 sps:$4 sm:$0xff]   ;;  %v1763_v52 = vld [vmem:[#allocation10 + $0xa4] ss:$8 sps:$4 sm:$0xff]   ;;  %v1767_v55 = vld [vmem:[#allocation10 + $0xa0] ss:$8 sps:$4 sm:$0xff]  }
  0x7c   :  { %v1762_v51 = vld [vmem:[#allocation10 + $0x290] ss:$8 sps:$4 sm:$0xff]   ;;  %v1765_v53 = vld [vmem:[#allocation10 + $0x2a4] ss:$8 sps:$4 sm:$0xff]   ;;  %v1768_v56 = vld [vmem:[#allocation10 + $0x2a0] ss:$8 sps:$4 sm:$0xff]  }
  0x7d   :  { %1147 = vmatpush1.bf16.msra.mxu1 %v1725_v26  ;;  %v1769_v57 = vld [vmem:[#allocation10 + $0xb4] ss:$8 sps:$4 sm:$0xff]   ;;  %v1773_v59 = vld [vmem:[#allocation10 + $0xb0] ss:$8 sps:$4 sm:$0xff]   ;;  %v2229_v60 = vshrl.u32 %v122_v54, 7  ;;  %v108_v25 = vld [vmem:[#allocation8 + $0x8] sm:$0xff] }
  0x7e   :  { %1229 = vmatpush1.bf16.msra.mxu0 %v1726_v27  ;;  %1148 = vmatprep.subr.bf16.mxu1 %v1727_v28  ;;  %v1771_v58 = vld [vmem:[#allocation10 + $0x2b4] ss:$8 sps:$4 sm:$0xff]   ;;  %v1774_v61 = vld [vmem:[#allocation10 + $0x2b0] ss:$8 sps:$4 sm:$0xff]   ;;  %v1775_v62 = vld [vmem:[#allocation10 + $0xc4] ss:$8 sps:$4 sm:$0xff]  }
  0x7f   :  { %1230 = vmatprep.subr.bf16.mxu0 %v1729_v29  ;;  %v1777_v63 = vld [vmem:[#allocation10 + $0x2c4] ss:$8 sps:$4 sm:$0xff]   ;;  %v1779_v0 = vld [vmem:[#allocation10 + $0xc0] ss:$8 sps:$4 sm:$0xff]   ;;  %v2232_v1 = vsub.s32 2, %v2229_v60  ;;  %v189_v2 = vsub.s32 6, %v2229_v60 }
  0x80   :  { %v1780_v3 = vld [vmem:[#allocation10 + $0x2c0] ss:$8 sps:$4 sm:$0xff]   ;;  %v1781_v4 = vld [vmem:[#allocation10 + $0xd4] ss:$8 sps:$4 sm:$0xff]   ;;  %v1785_v9 = vld [vmem:[#allocation10 + $0xd0] ss:$8 sps:$4 sm:$0xff]  }
  0x81   :  { %1149 = vmatpush1.bf16.msra.mxu1 %v1731_v30  ;;  %v2238_v5 = vld [vmem:[%s2340_s4] sm:$0xff]  ;;  %v1787_v11 = vld [vmem:[#allocation10 + $0xe4] ss:$8 sps:$4 sm:$0xff]   ;;  %v1791_v13 = vld [vmem:[#allocation10 + $0xe0] ss:$8 sps:$4 sm:$0xff]   ;;  %v2246_v21 = vsub.s32 0, %v2229_v60 }
  0x82   :  { %1231 = vmatpush1.bf16.msra.mxu0 %v1732_v31  ;;  %1150 = vmatprep.subr.bf16.mxu1 %v1733_v32  ;;  %v1783_v6 = vld [vmem:[#allocation10 + $0x2d4] ss:$8 sps:$4 sm:$0xff]   ;;  %v174_v7 = vrot.slane %v2238_v5, %v2232_v1  ;;  %v2243_v8 = vrot.slane %v2238_v5, %v189_v2  ;;  %v1786_v10 = vld [vmem:[#allocation10 + $0x2d0] ss:$8 sps:$4 sm:$0xff]   ;;  %v1789_v12 = vld [vmem:[#allocation10 + $0x2e4] ss:$8 sps:$4 sm:$0xff]  }
  0x83   :  { %1232 = vmatprep.subr.bf16.mxu0 %v1735_v33  ;;  %v1792_v14 = vld [vmem:[#allocation10 + $0x2e0] ss:$8 sps:$4 sm:$0xff]   ;;  %v1793_v15 = vld [vmem:[#allocation10 + $0xf4] ss:$8 sps:$4 sm:$0xff]   ;;  %v1797_v17 = vld [vmem:[#allocation10 + $0xf0] ss:$8 sps:$4 sm:$0xff]  }
  0x84   :  { %v1795_v16 = vld [vmem:[#allocation10 + $0x2f4] ss:$8 sps:$4 sm:$0xff]   ;;  %v1798_v18 = vld [vmem:[#allocation10 + $0x2f0] ss:$8 sps:$4 sm:$0xff]   ;;  %v1801_v19 = vld [vmem:[#allocation10 + $0x104] ss:$8 sps:$4 sm:$0xff]  }
  0x85   :  { %1151 = vmatpush1.bf16.msra.mxu1 %v1737_v34  ;;  %v1804_v20 = vld [vmem:[#allocation10 + $0x304] ss:$8 sps:$4 sm:$0xff]   ;;  %v2248_v22 = vld [vmem:[#allocation8 + $0x10] sm:$0xff]  ;;  %v2251_v23 = vsub.s32 1, %v2229_v60  ;;  %v185_v26 = vsub.s32 5, %v2229_v60  ;;  %v181_v27 = vsub.s32 4, %v2229_v60 }
  0x86   :  { %1233 = vmatpush1.bf16.msra.mxu0 %v1738_v35  ;;  %1152 = vmatprep.subr.bf16.mxu1 %v1739_v36  ;;  %v2253_v24 = vld [vmem:[#allocation8 + $0x30] sm:$0xff]  ;;  %v112_v29 = vld [vmem:[#allocation8 + $0x28] sm:$0xff]  ;;  %v177_v30 = vsub.s32 3, %v2229_v60  ;;  %v193_v31 = vsub.s32 7, %v2229_v60  ;;  %v133_v32 = vrot.slane %v2248_v22, %v2246_v21  ;;  %v107_v34 = vld [vmem:[#allocation8] sm:$0xff]  ;;  %v284_v36 = vrot.slane %v2248_v22, %v2232_v1  ;;  %s2063_s11 = scalar_lea.vmem %s1502_s10, 128 }
  0x87   :  { %1234 = vmatprep.subr.bf16.mxu0 %v1741_v37  ;;  %v229_v28 = vrot.slane %v2248_v22, %v2251_v23  ;;  %v245_v33 = vrot.slane %v2253_v24, %v2251_v23  ;;  %v111_v35 = vld [vmem:[#allocation8 + $0x20] sm:$0xff]  ;;  %v149_v37 = vrot.slane %v2253_v24, %v2246_v21  ;;  %v276_v54 = vrot.slane %v107_v34, %v2232_v1  ;;  %p2064_p6 = scmp.ne.s32.totalorder %s1502_s10, %s2063_s11  ;;  %p2069_p8 = scmp.lt.s32.totalorder %s2063_s11, %s2063_s11 }
  0x88   :  { %v194_v60 = vrot.slane %v2238_v5, %v193_v31 }
  0x89   :  { %1153 = vmatpush1.bf16.msra.mxu1 %v1743_v38  ;;  %v300_v38 = vrot.slane %v2253_v24, %v2232_v1  ;;  %p2070_p9 = por %p2069_p8, %p2068_p7 }
  0x8a   :  { %1235 = vmatpush1.bf16.msra.mxu0 %v1744_v39  ;;  %1154 = vmatprep.subr.bf16.mxu1 %v1745_v40  ;;  %v129_v39 = vrot.slane %v108_v25, %v2246_v21  ;;  %v170_v40 = vrot.slane %v2238_v5, %v2251_v23 }
  0x8b   :  { %1236 = vmatprep.subr.bf16.mxu0 %v1747_v41  ;;  %v225_v41 = vrot.slane %v108_v25, %v2251_v23  ;;  %p2071_p10 = pnand %p2070_p9, %p2064_p6 }
  0x8d   :  { %1155 = vmatpush1.bf16.msra.mxu1 %v1749_v42  ;;  %v280_v42 = vrot.slane %v108_v25, %v2232_v1 }
  0x8e   :  { %1237 = vmatpush1.bf16.msra.mxu0 %v1750_v43  ;;  %1156 = vmatprep.subr.bf16.mxu1 %v1751_v44  ;;  %v145_v43 = vrot.slane %v112_v29, %v2246_v21  ;;  %v186_v44 = vrot.slane %v2238_v5, %v185_v26 }
  0x8f   :  { %1238 = vmatprep.subr.bf16.mxu0 %v1753_v45  ;;  %v241_v45 = vrot.slane %v112_v29, %v2251_v23 }
  0x91   :  { %1157 = vmatpush1.bf16.msra.mxu1 %v1755_v46  ;;  %v296_v46 = vrot.slane %v112_v29, %v2232_v1 }
  0x92   :  { %1239 = vmatpush1.bf16.msra.mxu0 %v1756_v47  ;;  %1158 = vmatprep.subr.bf16.mxu1 %v1757_v48  ;;  %v110_v47 = vld [vmem:[#allocation8 + $0x18] sm:$0xff]  ;;  %v125_v48 = vrot.slane %v107_v34, %v2246_v21 }
  0x93   :  { %1240 = vmatprep.subr.bf16.mxu0 %v1759_v49  ;;  %v166_v49 = vrot.slane %v2238_v5, %v2246_v21 }
  0x95   :  { %1159 = vmatpush1.bf16.msra.mxu1 %v1761_v50  ;;  %v141_v50 = vrot.slane %v111_v35, %v2246_v21 }
  0x96   :  { %1241 = vmatpush1.bf16.msra.mxu0 %v1762_v51  ;;  %1160 = vmatprep.subr.bf16.mxu1 %v1763_v52  ;;  %v182_v51 = vrot.slane %v2238_v5, %v181_v27  ;;  %v114_v52 = vld [vmem:[#allocation8 + $0x38] sm:$0xff] }
  0x97   :  { %1242 = vmatprep.subr.bf16.mxu0 %v1765_v53  ;;  %v221_v53 = vrot.slane %v107_v34, %v2251_v23  ;;  %v304_v2 = vrot.slane %v114_v52, %v2232_v1 }
  0x99   :  { %1161 = vmatpush1.bf16.msra.mxu1 %v1767_v55  ;;  %v292_v55 = vrot.slane %v111_v35, %v2232_v1 }
  0x9a   :  { %1243 = vmatpush1.bf16.msra.mxu0 %v1768_v56  ;;  %1162 = vmatprep.subr.bf16.mxu1 %v1769_v57  ;;  %v178_v56 = vrot.slane %v2238_v5, %v177_v30  ;;  %v237_v57 = vrot.slane %v111_v35, %v2251_v23 }
  0x9b   :  { %1244 = vmatprep.subr.bf16.mxu0 %v1771_v58  ;;  %v137_v58 = vrot.slane %v110_v47, %v2246_v21 }
  0x9d   :  { %1163 = vmatpush1.bf16.msra.mxu1 %v1773_v59  ;;  %v233_v59 = vrot.slane %v110_v47, %v2251_v23 }
  0x9e   :  { %1245 = vmatpush1.bf16.msra.mxu0 %v1774_v61  ;;  %1164 = vmatprep.subr.bf16.mxu1 %v1775_v62  ;;  %v288_v62 = vrot.slane %v110_v47, %v2232_v1 }
  0x9f   :  { %1246 = vmatprep.subr.bf16.mxu0 %v1777_v63  ;;  %v153_v63 = vrot.slane %v114_v52, %v2246_v21 }
  0xa1   :  { %1165 = vmatpush1.bf16.msra.mxu1 %v1779_v0  ;;  %v249_v0 = vrot.slane %v114_v52, %v2251_v23 }
  0xa2   :  { %1247 = vmatpush1.bf16.msra.mxu0 %v1780_v3  ;;  %1166 = vmatprep.subr.bf16.mxu1 %v1781_v4 }
  0xa3   :  { %1248 = vmatprep.subr.bf16.mxu0 %v1783_v6 }
  0xa5   :  { %1167 = vmatpush1.bf16.msra.mxu1 %v1785_v9 }
  0xa6   :  { %1249 = vmatpush1.bf16.msra.mxu0 %v1786_v10  ;;  %1168 = vmatprep.subr.bf16.mxu1 %v1787_v11 }
  0xa7   :  { %1250 = vmatprep.subr.bf16.mxu0 %v1789_v12 }
  0xa9   :  { %1169 = vmatpush1.bf16.msra.mxu1 %v1791_v13 }
  0xaa   :  { %1251 = vmatpush1.bf16.msra.mxu0 %v1792_v14  ;;  %1170 = vmatprep.subr.bf16.mxu1 %v1793_v15 }
  0xab   :  { %1252 = vmatprep.subr.bf16.mxu0 %v1795_v16 }
  0xad   :  { %1171 = vmatpush1.bf16.msra.mxu1 %v1797_v17 }
  0xae   :  { %1253 = vmatpush1.bf16.msra.mxu0 %v1798_v18  ;;  %1181 = vmatprep.subr.bf16.mxu1 %v1801_v19 }
  0xaf   :  { %1263 = vmatprep.subr.bf16.mxu0 %v1804_v20 }
  0xff   :  { %v121_v61 = vpop.xlane.xlu0 %120 }
 0x100   :  { %v272_v3 = vpop.xlane.xlu1 %271  ;;  %v155_v4 = vmul.f32 %v129_v39, %v121_v61  ;;  %v159_v6 = vmul.f32 %v145_v43, %v121_v61  ;;  %v154_v9 = vmul.f32 %v125_v48, %v121_v61  ;;  %v158_v10 = vmul.f32 %v141_v50, %v121_v61 }
 0x101   :  { %v306_v11 = vmul.f32 %v280_v42, %v272_v3  ;;  %v310_v12 = vmul.f32 %v296_v46, %v272_v3  ;;  %v305_v13 = vmul.f32 %v276_v54, %v272_v3  ;;  %v309_v14 = vmul.f32 %v292_v55, %v272_v3 }
 0x102   :  { %v204_v15 = vadd.f32 %v170_v40, %v155_v4  ;;  %v208_v16 = vadd.f32 %v186_v44, %v159_v6  ;;  %v203_v17 = vadd.f32 %v166_v49, %v154_v9  ;;  %v207_v18 = vadd.f32 %v182_v51, %v158_v10 }
 0x103   :  { %v217_v19 = vpop.xlane.xlu0 %216  ;;  %v157_v20 = vmul.f32 %v137_v58, %v121_v61  ;;  %v308_v25 = vmul.f32 %v288_v62, %v272_v3  ;;  %v161_v26 = vmul.f32 %v153_v63, %v121_v61  ;;  %v312_v23 = vmul.f32 %v304_v2, %v272_v3 }
 0x104   :  { %v252_v27 = vmul.f32 %v229_v28, %v217_v19  ;;  %v256_v29 = vmul.f32 %v245_v33, %v217_v19  ;;  %v251_v30 = vmul.f32 %v225_v41, %v217_v19  ;;  %v255_v31 = vmul.f32 %v241_v45, %v217_v19 }
 0x105   :  { %v250_v34 = vmul.f32 %v221_v53, %v217_v19  ;;  %v254_v35 = vmul.f32 %v237_v57, %v217_v19  ;;  %v206_v39 = vadd.f32 %v178_v56, %v157_v20  ;;  %v253_v42 = vmul.f32 %v233_v59, %v217_v19 }
 0x106   :  { %v259_v43 = vadd.f32 %v251_v30, %v204_v15  ;;  %v263_v46 = vadd.f32 %v255_v31, %v208_v16  ;;  %v210_v47 = vadd.f32 %v194_v60, %v161_v26  ;;  %v257_v40 = vmul.f32 %v249_v0, %v217_v19 }
 0x107   :  { %v258_v44 = vadd.f32 %v250_v34, %v203_v17  ;;  %v262_v48 = vadd.f32 %v254_v35, %v207_v18  ;;  %v261_v49 = vadd.f32 %v253_v42, %v206_v39  ;;  %v156_v50 = vmul.f32 %v133_v32, %v121_v61  ;;  %v1799_v18 = vld [vmem:[#allocation10 + $0x100] ss:$8 sps:$4 sm:$0xff]   ;;  %v1807_v34 = vld [vmem:[#allocation10 + $0x114] ss:$8 sps:$4 sm:$0xff]  }
 0x108   :  { %v314_v51 = vadd.f32 %v306_v11, %v259_v43  ;;  %v318_v28 = vadd.f32 %v310_v12, %v263_v46  ;;  %v265_v33 = vadd.f32 %v257_v40, %v210_v47  ;;  %v307_v41 = vmul.f32 %v284_v36, %v272_v3  ;;  %v1810_v39 = vld [vmem:[#allocation10 + $0x314] ss:$8 sps:$4 sm:$0xff]   ;;  %v1805_v43 = vld [vmem:[#allocation10 + $0x110] ss:$8 sps:$4 sm:$0xff]   ;;  %v1813_v47 = vld [vmem:[#allocation10 + $0x124] ss:$8 sps:$4 sm:$0xff]  }
 0x109   :  { %v313_v45 = vadd.f32 %v305_v13, %v258_v44  ;;  %v317_v52 = vadd.f32 %v309_v14, %v262_v48  ;;  %v316_v53 = vadd.f32 %v308_v25, %v261_v49  ;;  %v205_v54 = vadd.f32 %v174_v7, %v156_v50  ;;  %v1808_v46 = vld [vmem:[#allocation10 + $0x310] ss:$8 sps:$4 sm:$0xff]   ;;  %v1816_v40 = vld [vmem:[#allocation10 + $0x324] ss:$8 sps:$4 sm:$0xff]   ;;  %v1811_v44 = vld [vmem:[#allocation10 + $0x120] ss:$8 sps:$4 sm:$0xff]  }
 0x10a   :  { %v331_v55 = vmul.f32 0.70710677, %v314_v51  ;;  %v335_v56 = vmul.f32 0.70710677, %v318_v28  ;;  %v320_v59 = vadd.f32 %v312_v23, %v265_v33  ;;  %v160_v22 = vmul.f32 %v149_v37, %v121_v61  ;;  %v1802_v23 = vld [vmem:[#allocation10 + $0x300] ss:$8 sps:$4 sm:$0xff]  }
 0x10b   :  { %v330_v57 = vmul.f32 0.70710677, %v313_v45  ;;  %v334_v58 = vmul.f32 0.70710677, %v317_v52  ;;  %v333_v32 = vmul.f32 0.70710677, %v316_v53  ;;  %v260_v60 = vadd.f32 %v252_v27, %v205_v54 }
 0x10c   :  { %1911 = verf.f32 %v331_v55  ;;  %v311_v36 = vmul.f32 %v300_v38, %v272_v3  ;;  %v337_v5 = vmul.f32 0.70710677, %v320_v59  ;;  %v209_v62 = vadd.f32 %v2243_v8, %v160_v22  ;;  %v1814_v48 = vld [vmem:[#allocation10 + $0x320] ss:$8 sps:$4 sm:$0xff]   ;;  %v1819_v49 = vld [vmem:[#allocation10 + $0x134] ss:$8 sps:$4 sm:$0xff]  }
 0x10d   :  { %1913 = verf.f32 %v335_v56  ;;  %v2312_v7 = vadd.f32 %v307_v41, %v260_v60  ;;  %v322_v21 = vmul.f32 0.5, %v314_v51  ;;  %v326_v6 = vmul.f32 0.5, %v318_v28  ;;  %v1822_v50 = vld [vmem:[#allocation10 + $0x334] ss:$8 sps:$4 sm:$0xff]   ;;  %v1817_v51 = vld [vmem:[#allocation10 + $0x130] ss:$8 sps:$4 sm:$0xff]  }
 0x10e   :  { %1915 = verf.f32 %v330_v57  ;;  %v264_v63 = vadd.f32 %v256_v29, %v209_v62  ;;  %v321_v3 = vmul.f32 0.5, %v313_v45  ;;  %v325_v12 = vmul.f32 0.5, %v317_v52  ;;  %v1820_v28 = vld [vmem:[#allocation10 + $0x330] ss:$8 sps:$4 sm:$0xff]   ;;  %v1825_v33 = vld [vmem:[#allocation10 + $0x144] ss:$8 sps:$4 sm:$0xff]  }
 0x10f   :  { %1917 = verf.f32 %v334_v58  ;;  %v324_v16 = vmul.f32 0.5, %v316_v53  ;;  %v328_v25 = vmul.f32 0.5, %v320_v59  ;;  %v1828_v41 = vld [vmem:[#allocation10 + $0x344] ss:$8 sps:$4 sm:$0xff]   ;;  %v1823_v45 = vld [vmem:[#allocation10 + $0x140] ss:$8 sps:$4 sm:$0xff]  }
 0x110   :  { %1919 = verf.f32 %v333_v32  ;;  %v2315_v0 = vadd.f32 %v311_v36, %v264_v63  ;;  %v1826_v52 = vld [vmem:[#allocation10 + $0x340] ss:$8 sps:$4 sm:$0xff]   ;;  %v1831_v53 = vld [vmem:[#allocation10 + $0x154] ss:$8 sps:$4 sm:$0xff]   ;;  %v1829_v55 = vld [vmem:[#allocation10 + $0x150] ss:$8 sps:$4 sm:$0xff]  }
 0x111   :  { %1921 = verf.f32 %v337_v5  ;;  %v1834_v54 = vld [vmem:[#allocation10 + $0x354] ss:$8 sps:$4 sm:$0xff]   ;;  %v1832_v56 = vld [vmem:[#allocation10 + $0x350] ss:$8 sps:$4 sm:$0xff]   ;;  %v1837_v57 = vld [vmem:[#allocation10 + $0x164] ss:$8 sps:$4 sm:$0xff]  }
 0x112   :  { %v1840_v58 = vld [vmem:[#allocation10 + $0x364] ss:$8 sps:$4 sm:$0xff]   ;;  %v1835_v32 = vld [vmem:[#allocation10 + $0x160] ss:$8 sps:$4 sm:$0xff]   ;;  %v1843_v60 = vld [vmem:[#allocation10 + $0x174] ss:$8 sps:$4 sm:$0xff]  }
 0x113   :  { %v1838_v59 = vld [vmem:[#allocation10 + $0x360] ss:$8 sps:$4 sm:$0xff]   ;;  %v1846_v22 = vld [vmem:[#allocation10 + $0x374] ss:$8 sps:$4 sm:$0xff]   ;;  %v1841_v36 = vld [vmem:[#allocation10 + $0x170] ss:$8 sps:$4 sm:$0xff]  }
 0x114   :  { %v1844_v5 = vld [vmem:[#allocation10 + $0x370] ss:$8 sps:$4 sm:$0xff]   ;;  %v1849_v62 = vld [vmem:[#allocation10 + $0x184] ss:$8 sps:$4 sm:$0xff]  }
 0x115   :  { %v1852_v63 = vld [vmem:[#allocation10 + $0x384] ss:$8 sps:$4 sm:$0xff]  }
 0x116   :  { %v1912_v2 = vpop.eup %1911 }
 0x117   :  { %v1914_v4 = vpop.eup %1913  ;;  %v347_v37 = vadd.f32 1.0, %v1912_v2  ;;  %v1847_v2 = vld [vmem:[#allocation10 + $0x180] ss:$8 sps:$4 sm:$0xff]  }
 0x118   :  { %v1916_v61 = vpop.eup %1915  ;;  %v351_v1 = vadd.f32 1.0, %v1914_v4  ;;  %v1850_v4 = vld [vmem:[#allocation10 + $0x380] ss:$8 sps:$4 sm:$0xff]  }
 0x119   :  { %v1918_v24 = vpop.eup %1917  ;;  %v355_v38 = vmul.f32 %v347_v37, %v322_v21  ;;  %v346_v9 = vadd.f32 1.0, %v1916_v61  ;;  %v1855_v21 = vld [vmem:[#allocation10 + $0x194] ss:$8 sps:$4 sm:$0xff]   ;;  %v1853_v61 = vld [vmem:[#allocation10 + $0x190] ss:$8 sps:$4 sm:$0xff]  }
 0x11a   :  { %v1920_v10 = vpop.eup %1919  ;;  %v359_v11 = vmul.f32 %v351_v1, %v326_v6  ;;  %v350_v8 = vadd.f32 1.0, %v1918_v24  ;;  %v1858_v37 = vld [vmem:[#allocation10 + $0x394] ss:$8 sps:$4 sm:$0xff]   ;;  %v1856_v6 = vld [vmem:[#allocation10 + $0x390] ss:$8 sps:$4 sm:$0xff]  }
 0x11b   :  { %v1922_v13 = vpop.eup %1921  ;;  %v363_v14 = vpack.c.bf16 %v355_v38, %v355_v38  ;;  %v354_v15 = vmul.f32 %v346_v9, %v321_v3  ;;  %v349_v17 = vadd.f32 1.0, %v1920_v10  ;;  %v1861_v1 = vld [vmem:[#allocation10 + $0x1a4] ss:$8 sps:$4 sm:$0xff]   ;;  %v1859_v38 = vld [vmem:[#allocation10 + $0x1a0] ss:$8 sps:$4 sm:$0xff]  }
 0x11c   :  { %v367_v19 = vpack.c.bf16 %v359_v11, %v359_v11  ;;  %v358_v20 = vmul.f32 %v350_v8, %v325_v12  ;;  %v353_v26 = vadd.f32 1.0, %v1922_v13  ;;  %v1864_v24 = vld [vmem:[#allocation10 + $0x3a4] ss:$8 sps:$4 sm:$0xff]   ;;  %v332_v3 = vmul.f32 0.70710677, %v2312_v7 }
 0x11d   :  { %1172 = vmatprep.mubr.bf16.mxu1 %v363_v14  ;;  %v362_v27 = vpack.c.bf16 %v354_v15, %v354_v15  ;;  %v357_v29 = vmul.f32 %v349_v17, %v324_v16  ;;  %v1862_v9 = vld [vmem:[#allocation10 + $0x3a0] ss:$8 sps:$4 sm:$0xff]   ;;  %v1867_v10 = vld [vmem:[#allocation10 + $0x1b4] ss:$8 sps:$4 sm:$0xff]   ;;  %v336_v11 = vmul.f32 0.70710677, %v2315_v0 }
 0x11e   :  { %1254 = vmatprep.mubr.bf16.mxu0 %v367_v19  ;;  %v366_v30 = vpack.c.bf16 %v358_v20, %v358_v20  ;;  %v361_v31 = vmul.f32 %v353_v26, %v328_v25  ;;  %v1870_v12 = vld [vmem:[#allocation10 + $0x3b4] ss:$8 sps:$4 sm:$0xff]   ;;  %v1865_v8 = vld [vmem:[#allocation10 + $0x1b0] ss:$8 sps:$4 sm:$0xff]   ;;  %1923 = verf.f32 %v332_v3  ;;  %v1873_v14 = vld [vmem:[#allocation10 + $0x1c4] ss:$8 sps:$4 sm:$0xff]  }
 0x11f   :  { %1173 = vmatmul.mubr.bf16.vlgmr.msra.gmra.mrb[0].mxu1 %v362_v27  ;;  %v365_v35 = vpack.c.bf16 %v357_v29, %v357_v29  ;;  %v1868_v13 = vld [vmem:[#allocation10 + $0x3b0] ss:$8 sps:$4 sm:$0xff]   ;;  %1925 = verf.f32 %v336_v11  ;;  %v1876_v15 = vld [vmem:[#allocation10 + $0x3c4] ss:$8 sps:$4 sm:$0xff]   ;;  %v1871_v16 = vld [vmem:[#allocation10 + $0x1c0] ss:$8 sps:$4 sm:$0xff]  }
 0x120   :  { %1182 = vmatpush1.bf16.msra.mxu1 %v1799_v18  ;;  %1255 = vmatmul.mubr.bf16.vlgmr.msra.gmra.mrb[0].mxu0 %v366_v30  ;;  %v369_v42 = vpack.c.bf16 %v361_v31, %v361_v31  ;;  %v1874_v17 = vld [vmem:[#allocation10 + $0x3c0] ss:$8 sps:$4 sm:$0xff]   ;;  %v1879_v18 = vld [vmem:[#allocation10 + $0x1d4] ss:$8 sps:$4 sm:$0xff]   ;;  %v1877_v20 = vld [vmem:[#allocation10 + $0x1d0] ss:$8 sps:$4 sm:$0xff]  }
 0x121   :  { %1264 = vmatpush1.bf16.msra.mxu0 %v1802_v23  ;;  %1213 = vmatprep.mubr.bf16.mxu1 %v365_v35  ;;  %v1882_v19 = vld [vmem:[#allocation10 + $0x3d4] ss:$8 sps:$4 sm:$0xff]   ;;  %v1880_v25 = vld [vmem:[#allocation10 + $0x3d0] ss:$8 sps:$4 sm:$0xff]   ;;  %v1885_v26 = vld [vmem:[#allocation10 + $0x1e4] ss:$8 sps:$4 sm:$0xff]  }
 0x122   :  { %1295 = vmatprep.mubr.bf16.mxu0 %v369_v42  ;;  %1183 = vmatprep.subr.bf16.mxu1 %v1807_v34  ;;  %v1888_v27 = vld [vmem:[#allocation10 + $0x3e4] ss:$8 sps:$4 sm:$0xff]   ;;  %v1883_v30 = vld [vmem:[#allocation10 + $0x1e0] ss:$8 sps:$4 sm:$0xff]   ;;  %v1891_v34 = vld [vmem:[#allocation10 + $0x1f4] ss:$8 sps:$4 sm:$0xff]  }
 0x123   :  { %1265 = vmatprep.subr.bf16.mxu0 %v1810_v39  ;;  %v1886_v31 = vld [vmem:[#allocation10 + $0x3e0] ss:$8 sps:$4 sm:$0xff]   ;;  %v1894_v39 = vld [vmem:[#allocation10 + $0x3f4] ss:$8 sps:$4 sm:$0xff]  }
 0x124   :  { %1184 = vmatpush1.bf16.msra.mxu1 %v1805_v43  ;;  %v323_v43 = vmul.f32 0.5, %v2312_v7  ;;  %v1898_v7 = vld [vmem:[#allocation11 + $0x8] sm:$0xff]  }
 0x125   :  { %1266 = vmatpush1.bf16.msra.mxu0 %v1808_v46  ;;  %1185 = vmatprep.subr.bf16.mxu1 %v1813_v47  ;;  %v1889_v46 = vld [vmem:[#allocation10 + $0x1f0] ss:$8 sps:$4 sm:$0xff]   ;;  %v327_v47 = vmul.f32 0.5, %v2315_v0 }
 0x126   :  { %1267 = vmatprep.subr.bf16.mxu0 %v1816_v40  ;;  %v1892_v40 = vld [vmem:[#allocation10 + $0x3f0] ss:$8 sps:$4 sm:$0xff]  }
 0x127   :  { %v1899_v0 = vld [vmem:[#allocation11 + $0x50] sm:$0xff]  }
 0x128   :  { %1186 = vmatpush1.bf16.msra.mxu1 %v1811_v44  ;;  %v1924_v23 = vpop.eup %1923 }
 0x129   :  { %1268 = vmatpush1.bf16.msra.mxu0 %v1814_v48  ;;  %1187 = vmatprep.subr.bf16.mxu1 %v1819_v49  ;;  %v1926_v29 = vpop.eup %1925  ;;  %v348_v35 = vadd.f32 1.0, %v1924_v23  ;;  %v1895_v48 = vld [vmem:[#allocation11 + $0x40] sm:$0xff]  }
 0x12a   :  { %1269 = vmatprep.subr.bf16.mxu0 %v1822_v50  ;;  %v352_v42 = vadd.f32 1.0, %v1926_v29  ;;  %v1896_v50 = vld [vmem:[#allocation11] sm:$0xff]  }
 0x12b   :  { %v356_v44 = vmul.f32 %v348_v35, %v323_v43 }
 0x12c   :  { %1188 = vmatpush1.bf16.msra.mxu1 %v1817_v51  ;;  %v360_v49 = vmul.f32 %v352_v42, %v327_v47 }
 0x12d   :  { %1270 = vmatpush1.bf16.msra.mxu0 %v1820_v28  ;;  %1189 = vmatprep.subr.bf16.mxu1 %v1825_v33  ;;  %v364_v51 = vpack.c.bf16 %v356_v44, %v356_v44  ;;  %v1897_v28 = vld [vmem:[#allocation11 + $0x48] sm:$0xff]  }
 0x12e   :  { %1271 = vmatprep.subr.bf16.mxu0 %v1828_v41  ;;  %v368_v33 = vpack.c.bf16 %v360_v49, %v360_v49  ;;  %v1900_v41 = vld [vmem:[#allocation11 + $0x10] sm:$0xff]  }
 0x130   :  { %1190 = vmatpush1.bf16.msra.mxu1 %v1823_v45  ;;  %v1901_v45 = vld [vmem:[#allocation11 + $0x58] sm:$0xff]  }
 0x131   :  { %1272 = vmatpush1.bf16.msra.mxu0 %v1826_v52  ;;  %1191 = vmatprep.subr.bf16.mxu1 %v1831_v53  ;;  %v1902_v52 = vld [vmem:[#allocation11 + $0x18] sm:$0xff]   ;;  %v1903_v53 = vld [vmem:[#allocation11 + $0x60] sm:$0xff]  }
 0x132   :  { %1273 = vmatprep.subr.bf16.mxu0 %v1834_v54  ;;  %v1904_v54 = vld [vmem:[#allocation11 + $0x20] sm:$0xff]  }
 0x134   :  { %1192 = vmatpush1.bf16.msra.mxu1 %v1829_v55  ;;  %v1905_v55 = vld [vmem:[#allocation11 + $0x68] sm:$0xff]  }
 0x135   :  { %1274 = vmatpush1.bf16.msra.mxu0 %v1832_v56  ;;  %1193 = vmatprep.subr.bf16.mxu1 %v1837_v57  ;;  %v1906_v56 = vld [vmem:[#allocation11 + $0x28] sm:$0xff]   ;;  %v1907_v57 = vld [vmem:[#allocation11 + $0x70] sm:$0xff]  }
 0x136   :  { %1275 = vmatprep.subr.bf16.mxu0 %v1840_v58  ;;  %v1908_v58 = vld [vmem:[#allocation11 + $0x30] sm:$0xff]  }
 0x138   :  { %1194 = vmatpush1.bf16.msra.mxu1 %v1835_v32  ;;  %v1909_v32 = vld [vmem:[#allocation11 + $0x78] sm:$0xff]  }
 0x139   :  { %1276 = vmatpush1.bf16.msra.mxu0 %v1838_v59  ;;  %1195 = vmatprep.subr.bf16.mxu1 %v1843_v60  ;;  %v1910_v59 = vld [vmem:[#allocation11 + $0x38] sm:$0xff]   ;;  %v498_v60 = vld [vmem:[#allocation5] sm:$0xff] }
 0x13a   :  { %1277 = vmatprep.subr.bf16.mxu0 %v1846_v22  ;;  %v499_v22 = vld [vmem:[#allocation5 + $0x8] sm:$0xff] }
 0x13c   :  { %1196 = vmatpush1.bf16.msra.mxu1 %v1841_v36 }
 0x13d   :  { %1278 = vmatpush1.bf16.msra.mxu0 %v1844_v5  ;;  %1197 = vmatprep.subr.bf16.mxu1 %v1849_v62 }
 0x13e   :  { %1279 = vmatprep.subr.bf16.mxu0 %v1852_v63 }
 0x140   :  { %1198 = vmatpush1.bf16.msra.mxu1 %v1847_v2 }
 0x141   :  { %1280 = vmatpush1.bf16.msra.mxu0 %v1850_v4  ;;  %1199 = vmatprep.subr.bf16.mxu1 %v1855_v21 }
 0x142   :  { %1281 = vmatprep.subr.bf16.mxu0 %v1858_v37 }
 0x144   :  { %1200 = vmatpush1.bf16.msra.mxu1 %v1853_v61 }
 0x145   :  { %1282 = vmatpush1.bf16.msra.mxu0 %v1856_v6  ;;  %1201 = vmatprep.subr.bf16.mxu1 %v1861_v1 }
 0x146   :  { %1283 = vmatprep.subr.bf16.mxu0 %v1864_v24 }
 0x148   :  { %1202 = vmatpush1.bf16.msra.mxu1 %v1859_v38 }
 0x149   :  { %1284 = vmatpush1.bf16.msra.mxu0 %v1862_v9  ;;  %1203 = vmatprep.subr.bf16.mxu1 %v1867_v10 }
 0x14a   :  { %1285 = vmatprep.subr.bf16.mxu0 %v1870_v12 }
 0x14c   :  { %1204 = vmatpush1.bf16.msra.mxu1 %v1865_v8 }
 0x14d   :  { %1286 = vmatpush1.bf16.msra.mxu0 %v1868_v13  ;;  %1205 = vmatprep.subr.bf16.mxu1 %v1873_v14 }
 0x14e   :  { %1287 = vmatprep.subr.bf16.mxu0 %v1876_v15 }
 0x150   :  { %1206 = vmatpush1.bf16.msra.mxu1 %v1871_v16 }
 0x151   :  { %1288 = vmatpush1.bf16.msra.mxu0 %v1874_v17  ;;  %1207 = vmatprep.subr.bf16.mxu1 %v1879_v18 }
 0x152   :  { %1289 = vmatprep.subr.bf16.mxu0 %v1882_v19  ;;  %v1491_v19 = vld [vmem:[#allocation7] sm:$0xff] }
 0x153   :  { %vm1492_vm0 = vcmp.ne.s32.totalorder %v1491_v19, 0 }
 0x154   :  { %1208 = vmatpush1.bf16.msra.mxu1 %v1877_v20  ;;  %v1641_v20 = vld [vmem:[%s2343_s7] ss:$0 sm:$0xff] }
 0x155   :  { %1290 = vmatpush1.bf16.msra.mxu0 %v1880_v25  ;;  %1209 = vmatprep.subr.bf16.mxu1 %v1885_v26 }
 0x156   :  { %1291 = vmatprep.subr.bf16.mxu0 %v1888_v27 }
 0x158   :  { %1210 = vmatpush1.bf16.msra.mxu1 %v1883_v30 }
 0x159   :  { %1292 = vmatpush1.bf16.msra.mxu0 %v1886_v31  ;;  %1211 = vmatprep.subr.bf16.mxu1 %v1891_v34 }
 0x15a   :  { %1293 = vmatprep.subr.bf16.mxu0 %v1894_v39 }
 0x15c   :  { %1212 = vmatpush1.bf16.msra.mxu1 %v1889_v46 }
 0x15d   :  { %1294 = vmatpush1.bf16.msra.mxu0 %v1892_v40  ;;  %1658 = vmatprep.subr.bf16.mxu1 %v1895_v48 }
 0x15f   :  { %1214 = vmatmul.mubr.bf16.vlgmr.msra.gmra.mrb[0].mxu1 %v364_v51 }
 0x160   :  { %1296 = vmatmul.mubr.bf16.vlgmr.msra.gmra.mrb[0].mxu0 %v368_v33  ;;  %1659 = vmatpush3.bf16.msra.mxu1 %v1896_v50 }
 0x161   :  { %1660 = vmatprep.subr.bf16.mxu1 %v1897_v28 }
 0x164   :  { %1661 = vmatpush3.bf16.msra.mxu1 %v1898_v7 }
 0x165   :  { %1662 = vmatprep.subr.bf16.mxu1 %v1899_v0 }
 0x168   :  { %1663 = vmatpush3.bf16.msra.mxu1 %v1900_v41 }
 0x169   :  { %1664 = vmatprep.subr.bf16.mxu1 %v1901_v45 }
 0x16c   :  { %1665 = vmatpush3.bf16.msra.mxu1 %v1902_v52 }
 0x16d   :  { %1666 = vmatprep.subr.bf16.mxu1 %v1903_v53 }
 0x170   :  { %1667 = vmatpush3.bf16.msra.mxu1 %v1904_v54 }
 0x171   :  { %1668 = vmatprep.subr.bf16.mxu1 %v1905_v55 }
 0x174   :  { %1669 = vmatpush3.bf16.msra.mxu1 %v1906_v56 }
 0x175   :  { %1670 = vmatprep.subr.bf16.mxu1 %v1907_v57 }
 0x178   :  { %1671 = vmatpush3.bf16.msra.mxu1 %v1908_v58 }
 0x179   :  { %1672 = vmatprep.subr.bf16.mxu1 %v1909_v32 }
 0x17c   :  { %1673 = vmatpush3.bf16.msra.mxu1 %v1910_v59 }
 0x232   :  { %v1215_v36 = vpop.f32.mrb[0].mxu1 }
 0x233   :  { %v1680_v5 = vadd.f32 %v1215_v36, %v498_v60  ;;  %v1297_v62 = vpop.f32.mrb[0].mxu0  ;;  %v1217_v63 = vpop.f32.mrb[1].mxu1 }
 0x234   :  { %v1682_v2 = vadd.f32 %v1217_v63, %v499_v22  ;;  %v1299_v4 = vpop.f32.mrb[1].mxu0  ;;  %v1219_v21 = vpop.f32.mrb[2].mxu1 }
 0x235   :  { %v1681_v37 = vadd.f32 %v1680_v5, %v1297_v62  ;;  %v1301_v61 = vpop.f32.mrb[2].mxu0  ;;  %v1220_v6 = vpop.f32.mrb[3].mxu1 }
 0x236   :  { %v1683_v1 = vadd.f32 %v1682_v2, %v1299_v4  ;;  %v1302_v24 = vpop.f32.mrb[3].mxu0 }
 0x237   :  { %v1306_v38 = vmul.f32 0.70710677, %v1681_v37  ;;  %v1304_v11 = vmul.f32 0.5, %v1681_v37 }
 0x238   :  { %v1307_v3 = vmul.f32 0.70710677, %v1683_v1  ;;  %v1305_v8 = vmul.f32 0.5, %v1683_v1 }
 0x239   :  { %1927 = verf.f32 %v1306_v38 }
 0x23a   :  { %1929 = verf.f32 %v1307_v3 }
 0x243   :  { %v1928_v9 = vpop.eup %1927 }
 0x244   :  { %v1930_v10 = vpop.eup %1929  ;;  %v1310_v12 = vadd.f32 1.0, %v1928_v9 }
 0x245   :  { %v1311_v13 = vadd.f32 1.0, %v1930_v10 }
 0x246   :  { %v1312_v14 = vmul.f32 %v1310_v12, %v1304_v11 }
 0x247   :  { %v1313_v15 = vmul.f32 %v1311_v13, %v1305_v8 }
 0x248   :  { %v1314_v17 = vpack.c.bf16 %v1312_v14, %v1312_v14 }
 0x249   :  { %v1315_v16 = vpack.c.bf16 %v1313_v15, %v1313_v15 }
 0x24b   :  { %1483 = vmatprep.mubr.bf16.mxu1 %v1315_v16 }
 0x24c   :  { %1484 = vmatmul.mubr.bf16.vlgmr.msra.gmra.mrb[4].mxu1 %v1314_v17 }
 0x31f   :  { %v1674_v18 = vpop.f32.mrb[4].mxu1 }
 0x320   :  { %v1675_v25 = vpop.f32.mrb[5].mxu1 }
 0x321   :  { %v1676_v26 = vadd.f32 %v1675_v25, %v1674_v18  ;;  %v1677_v23 = vpop.f32.mrb[6].mxu1 }
 0x322   :  { %v1678_v27 = vpop.f32.mrb[7].mxu1 }
 0x323   :  { %v1486_v29 = vadd.f32 %v1676_v26, %v1641_v20 }
 0x325   :  { %v1493_v30 = vsel %vm1492_vm0, -10000.0, %v1486_v29 }
 0x326   :  { %1494 = vst [vmem:[#allocation13] sm:$0xff] %v1493_v30 }
 0x327   :  { %2074 = shalt.err (!%p2071_p10)
}
 0x328   :  { %s2075_s13 = scalar_lea.hbm %s2344_s8, 128 }
 0x329   :  { %p2076_p11 = scmp.ne.s32.totalorder %s2344_s8, %s2075_s13  ;;  %p2079_p12 = scmp.lt.u32.totalorder %s2075_s13, %s2344_s8 }
 0x32b   :  { %p2081_p13 = pnand %p2079_p12, %p2076_p11 }
 0x32d   :  { %2084 = shalt.err (!%p2081_p13)
}
 0x32e   :  { %1504 = dma.vmem_to_hbm [thread:$0]  %s1502_s10, 128, %s2344_s8, [#allocation4]  }
 0x32f   :  { %2093 = dma.done.wait [#allocation4], 128  }
 0x330   :  { %2094 = vsyncadd [#allocation4], 4294967168 }
 0x331   :  { %1508 = vsyncpa [#allocation3], 1 }
 0x332   :  { %1509 = vsyncpa [#allocation6], 1 }
 0x333   :  { %1510 = vsyncpa [#allocation9], 1 }
 0x334   :  { %1511 = vsyncpa [#allocation12], 1 }
 0x335   :  { %1512 = vsyncpa [#allocation4], 1 }

</bundles_post_ra>
